<compile_context>
chip_gen: v7x
topology: tpu7x:2x2x1
jax: 0.10.0
libtpu: 0.0.40
codegen_flags: <defaults>
</compile_context>

<pallas_src>
import jax
import jax.numpy as jnp
from jax.experimental import pallas as pl
from jax.experimental.pallas import tpu as pltpu

EMBEDDING_SIZE = 10
LANE = 128
SUBLANE = 8


# ---------------------------------------------------------------------------
# helpers
# ---------------------------------------------------------------------------
def _round_up(x, m):
    return ((x + m - 1) // m) * m


def _vmem_budget(*buffer_bytes):
    """Tile-arithmetic VMEM budget: x2 for double-buffering + headroom, capped
    so the request stays safe on v7x (64 MiB physical VMEM per TensorCore)."""
    total = sum(int(b) for b in buffer_bytes)
    return int(min(2 * total + (8 << 20), 48 << 20))


# ---------------------------------------------------------------------------
# Pallas kernels
# ---------------------------------------------------------------------------
def _gcn_layer1_fused_kernel(a_ref, x_ref, w0_ref, b0_ref, w1_ref,
                             o_ref, acc_ref):
    """acc += A_tile @ (X_tile @ W0);  at last k:  o = relu(acc + b0) @ W1."""
    k = pl.program_id(1)

    @pl.when(k == 0)
    def _():
        acc_ref[...] = jnp.zeros_like(acc_ref)

    # feature transform for this k tile (cheap: C_in_pad = 128) ...
    h0 = jnp.dot(x_ref[...], w0_ref[...], preferred_element_type=jnp.float32)
    # ... then propagate through the A tile (MXU, f32 accumulation).
    acc_ref[...] += jnp.dot(a_ref[...], h0.astype(jnp.bfloat16),
                            preferred_element_type=jnp.float32)

    @pl.when(k == pl.num_programs(1) - 1)
    def _():
        h = jnp.maximum(acc_ref[...] + b0_ref[...], 0.0)          # f32 epilogue
        o_ref[...] = jnp.dot(h.astype(jnp.bfloat16), w1_ref[...],
                             preferred_element_type=jnp.float32).astype(o_ref.dtype)


def _prop_pool_classifier_kernel(a_ref, p_ref, h_ref, pb_ref,
                                 wm0_ref, bm0_ref, wm1_ref, bm1_ref,
                                 o_ref, acc_ref):
    """Graph embedding  g = (P @ A) @ H1w + counts * b1  accumulated over the
    whole (j, i) grid in a tiny persistent VMEM scratch; at the very last grid
    step run the MLP classifier (tanh + linear, f32) and write a lane-dense
    [G_pad, 128] f32 slab."""
    j = pl.program_id(0)
    i = pl.program_id(1)

    @pl.when((j == 0) & (i == 0))
    def _():
        acc_ref[...] = pb_ref[...]            # init with pooled conv-2 bias

    # PA_tile = P[:, i_tile] @ A[i_tile, j_tile]   (f32, tiny rows)
    pa = jnp.dot(p_ref[...], a_ref[...], preferred_element_type=jnp.float32)
    # g += PA_tile @ H1w[j_tile]                  (f32 for accuracy, tiny)
    acc_ref[...] += jnp.dot(pa, h_ref[...].astype(jnp.float32),
                            preferred_element_type=jnp.float32)

    @pl.when((j == pl.num_programs(0) - 1) & (i == pl.num_programs(1) - 1))
    def _():
        g = acc_ref[...]                                           # f32
        g = jnp.tanh(jnp.dot(g, wm0_ref[...],
                             preferred_element_type=jnp.float32) + bm0_ref[...])
        o_ref[...] = (jnp.dot(g, wm1_ref[...],
                              preferred_element_type=jnp.float32) + bm1_ref[...])


# ---------------------------------------------------------------------------
# Graph preprocessing (plain JAX)
# ---------------------------------------------------------------------------
def _gcn_norm_adj(edge_index, num_nodes):
    """D^-1/2 (A + I) D^-1/2 from edge_index [2, E] (undirected).
    jnp.maximum with eye keeps the diagonal at 1 even if explicit self-loops
    are present in edge_index (matches PyG gcn_norm semantics)."""
    src, dst = edge_index[0], edge_index[1]
    adj = jnp.zeros((num_nodes, num_nodes), jnp.float32)
    adj = adj.at[src, dst].set(1.0)
    adj = jnp.maximum(adj, jnp.eye(num_nodes, dtype=jnp.float32))
    deg = adj.sum(axis=1)
    d_inv_sqrt = jnp.where(deg > 0, 1.0 / jnp.sqrt(deg), 0.0)
    return adj * d_inv_sqrt[:, None] * d_inv_sqrt[None, :]


def _pool_matrix(batch, num_graphs):
    """[G, N] one-hot assignment so that P @ X == global_add_pool(X, batch)."""
    return (batch[None, :] == jnp.arange(num_graphs)[:, None]).astype(jnp.float32)


def _pad2(w, rows, cols):
    out = jnp.zeros((rows, cols), w.dtype)
    return out.at[: w.shape[0], : w.shape[1]].set(w)


# ---------------------------------------------------------------------------
# Forward pass: 2 tiled pallas_calls
# ---------------------------------------------------------------------------
def gnn_wrapper_forward(x, edge_index, batch, params, num_graphs, tile_n=512):
    """tile_n default (512) targets v7x's 64 MiB VMEM; v6e/v5e (128 MiB) can go
    larger.  tile_n is clamped to the padded node count for small inputs."""
    n, c_in = x.shape
    hidden = params["wg0"].shape[1]

    h_pad = _round_up(hidden, LANE)
    c_pad = _round_up(c_in, LANE)
    out_pad = _round_up(EMBEDDING_SIZE, LANE)
    g_pad = _round_up(num_graphs, SUBLANE)

    tile_n = min(_round_up(tile_n, LANE), _round_up(n, LANE))
    n_pad = _round_up(n, tile_n)
    grid_n = n_pad // tile_n

    # ---- pad + cast inputs (bf16 MXU operands, f32 small/resident) ----------
    x_p = jnp.zeros((n_pad, c_pad), jnp.bfloat16).at[:n, :c_in].set(
        x.astype(jnp.bfloat16))
    a_p = jnp.zeros((n_pad, n_pad), jnp.bfloat16).at[:n, :n].set(
        _gcn_norm_adj(edge_index, n).astype(jnp.bfloat16))
    pool = _pool_matrix(batch, num_graphs)                 # [G, N] f32
    p_p = jnp.zeros((g_pad, n_pad), jnp.bfloat16).at[:num_graphs, :n].set(
        pool.astype(jnp.bfloat16))

    wg0 = _pad2(params["wg0"], c_pad, h_pad).astype(jnp.bfloat16)
    bg0 = _pad2(params["bg0"], 1, h_pad)                   # f32
    wg1 = _pad2(params["wg1"], h_pad, h_pad).astype(jnp.bfloat16)

    # pooled conv-2 bias:  (P @ 1_N) * b1  ==  per-graph node counts * b1
    counts = pool.sum(axis=1)                              # [G] f32
    pooled_b1 = _pad2(counts[:, None] * params["bg1"], g_pad, h_pad)   # f32

    wm0 = _pad2(params["wm0"], h_pad, h_pad)               # f32 (tiny, resident)
    bm0 = _pad2(params["bm0"], 1, h_pad)
    wm1 = _pad2(params["wm1"], h_pad, out_pad)
    bm1 = _pad2(params["bm1"], 1, out_pad)

    # ---- stage 1: h1w = relu(A @ (X @ Wg0) + bg0) @ Wg1 ---------------------
    h1w = pl.pallas_call(
        _gcn_layer1_fused_kernel,
        out_shape=jax.ShapeDtypeStruct((n_pad, h_pad), jnp.bfloat16),
        grid=(grid_n, grid_n),
        in_specs=[pl.BlockSpec((tile_n, tile_n), lambda i, k: (i, k)),   # A
                  pl.BlockSpec((tile_n, c_pad), lambda i, k: (k, 0)),    # X
                  pl.BlockSpec((c_pad, h_pad), lambda i, k: (0, 0)),     # W0
                  pl.BlockSpec((1, h_pad), lambda i, k: (0, 0)),         # b0
                  pl.BlockSpec((h_pad, h_pad), lambda i, k: (0, 0))],    # W1
        out_specs=pl.BlockSpec((tile_n, h_pad), lambda i, k: (i, 0)),
        scratch_shapes=[pltpu.VMEM((tile_n, h_pad), jnp.float32)],
        compiler_params=pltpu.CompilerParams(
            dimension_semantics=("parallel", "arbitrary"),
            vmem_limit_bytes=_vmem_budget(
                tile_n * tile_n * 2,      # A tile (bf16)
                tile_n * c_pad * 2,       # X tile (bf16)
                c_pad * h_pad * 2,        # W0 (resident)
                h_pad * 4,                # b0
                h_pad * h_pad * 2,        # W1 (resident)
                tile_n * h_pad * 2,       # output tile (bf16)
                tile_n * h_pad * 4)),     # f32 accumulator
    )(a_p, x_p, wg0, bg0, wg1)

    # ---- stage 2: out = MLP( (P @ A) @ h1w + counts * bg1 ) -----------------
    out_p = pl.pallas_call(
        _prop_pool_classifier_kernel,
        out_shape=jax.ShapeDtypeStruct((g_pad, out_pad), jnp.float32),
        grid=(grid_n, grid_n),
        in_specs=[pl.BlockSpec((tile_n, tile_n), lambda j, i: (i, j)),   # A
                  pl.BlockSpec((g_pad, tile_n), lambda j, i: (0, i)),    # P
                  pl.BlockSpec((tile_n, h_pad), lambda j, i: (j, 0)),    # h1w
                  pl.BlockSpec((g_pad, h_pad), lambda j, i: (0, 0)),     # pooled b1
                  pl.BlockSpec((h_pad, h_pad), lambda j, i: (0, 0)),     # Wm0
                  pl.BlockSpec((1, h_pad), lambda j, i: (0, 0)),         # bm0
                  pl.BlockSpec((h_pad, out_pad), lambda j, i: (0, 0)),   # Wm1
                  pl.BlockSpec((1, out_pad), lambda j, i: (0, 0))],      # bm1
        out_specs=pl.BlockSpec((g_pad, out_pad), lambda j, i: (0, 0)),
        scratch_shapes=[pltpu.VMEM((g_pad, h_pad), jnp.float32)],
        compiler_params=pltpu.CompilerParams(
            dimension_semantics=("arbitrary", "arbitrary"),
            vmem_limit_bytes=_vmem_budget(
                tile_n * tile_n * 2,      # A tile (bf16)
                g_pad * tile_n * 2,       # P tile (bf16)
                tile_n * h_pad * 2,       # h1w tile (bf16)
                g_pad * h_pad * 4,        # pooled bias (f32)
                h_pad * h_pad * 4,        # Wm0 (f32)
                h_pad * 4,                # bm0
                h_pad * out_pad * 4,      # Wm1 (f32)
                out_pad * 4,              # bm1
                g_pad * out_pad * 4,      # output (f32)
                g_pad * h_pad * 4)),      # f32 accumulator
    )(a_p, p_p, h1w, pooled_b1, wm0, bm0, wm1, bm1)

    # slice away lane/row padding outside the kernel (lane-dense store inside)
    return out_p[:num_graphs, :EMBEDDING_SIZE]


# ---------------------------------------------------------------------------
# Deterministic parameter construction (module __init__ shapes).
# ---------------------------------------------------------------------------
def init_params(key, in_channels, hidden_channels):
    ks = jax.random.split(key, 8)

    def lin(kw, fan_in, fan_out):
        lim = 1.0 / jnp.sqrt(fan_in)
        return jax.random.uniform(kw, (fan_in, fan_out), jnp.float32, -lim, lim)

    return {
        "wg0": lin(ks[0], in_channels, hidden_channels),
        "bg0": jax.random.uniform(ks[1], (1, hidden_channels), jnp.float32, -0.1, 0.1),
        "wg1": lin(ks[2], hidden_channels, hidden_channels),
        "bg1": jax.random.uniform(ks[3], (1, hidden_channels), jnp.float32, -0.1, 0.1),
        "wm0": lin(ks[4], hidden_channels, hidden_channels),
        "bm0": jax.random.uniform(ks[5], (1, hidden_channels), jnp.float32, -0.1, 0.1),
        "wm1": lin(ks[6], hidden_channels, EMBEDDING_SIZE),
        "bm1": jax.random.uniform(ks[7], (1, EMBEDDING_SIZE), jnp.float32, -0.1, 0.1),
    }


# Pure-JAX f32 reference (module semantics).
def reference_forward(x, edge_index, batch, params, num_graphs):
    a = _gcn_norm_adj(edge_index, x.shape[0])
    p = _pool_matrix(batch, num_graphs)
    h = jnp.maximum(a @ (x @ params["wg0"]) + params["bg0"], 0.0)
    h = a @ (h @ params["wg1"]) + params["bg1"]
    g = p @ h
    g = jnp.tanh(g @ params["wm0"] + params["bm0"])
    return g @ params["wm1"] + params["bm1"]


if __name__ == "__main__":
    key = jax.random.PRNGKey(0)
    k_x, k_p = jax.random.split(key)

    # Small synthetic batch: 2 ring graphs of 80 nodes each (N=160) so the
    # padded node dim (256) exercises a real 2x2 (row, k) tiling with 128 tiles.
    in_channels, hidden_channels, num_graphs = 4, 32, 2
    nodes_per_graph = 80
    n = num_graphs * nodes_per_graph

    edges = []
    for g in range(num_graphs):
        base = g * nodes_per_graph
        for i in range(nodes_per_graph):
            u, v = base + i, base + (i + 1) % nodes_per_graph
            edges.append((u, v))
            edges.append((v, u))          # undirected
    edge_index = jnp.array(edges, dtype=jnp.int32).T   # [2, E]

    batch = jnp.repeat(jnp.arange(num_graphs, dtype=jnp.int32), nodes_per_graph)
    x = jax.random.normal(k_x, (n, in_channels), jnp.float32)
    params = init_params(k_p, in_channels, hidden_channels)

    # small tile here to exercise the multi-tile grid at toy N; production
    # sizes use the 512 default (v7x) or larger (v6e/v5e, 128 MiB VMEM).
    out = gnn_wrapper_forward(x, edge_index, batch, params, num_graphs,
                              tile_n=128)
    out = jax.block_until_ready(out)

    ref = reference_forward(x, edge_index, batch, params, num_graphs)
    assert out.shape == (num_graphs, EMBEDDING_SIZE)
    assert jnp.allclose(out, ref, atol=5e-2, rtol=5e-2), (
        f"max abs err {jnp.max(jnp.abs(out - ref))}")

    print("KERNEL_OK")
</pallas_src>

<mosaic_0001>
module attributes {stable_mosaic.version = 11 : i64} {
  func.func @_gcn_layer1_fused_kernel(%arg0: i32, %arg1: i32, %arg2: memref<128x128xbf16, #tpu.memory_space<vmem>>, %arg3: memref<128x128xbf16, #tpu.memory_space<vmem>>, %arg4: memref<128x128xbf16, #tpu.memory_space<vmem>>, %arg5: memref<1x128xf32, #tpu.memory_space<vmem>>, %arg6: memref<128x128xbf16, #tpu.memory_space<vmem>>, %arg7: memref<128x128xbf16, #tpu.memory_space<vmem>>, %arg8: memref<128x128xf32, #tpu.memory_space<vmem>>) attributes {dimension_semantics = [#tpu.dimension_semantics<parallel>, #tpu.dimension_semantics<arbitrary>], iteration_bounds = array<i64: 2, 2>, scalar_prefetch = 0 : i64, scratch_operands = 1 : i64, tpu.core_type = #tpu.core_type<tc>, window_params = [{transform_indices = @transform_0, window_bounds = array<i64: 128, 128>}, {transform_indices = @transform_1, window_bounds = array<i64: 128, 128>}, {pipeline_mode = #tpu.pipeline_mode<synchronous>, transform_indices = @transform_2, window_bounds = array<i64: 128, 128>}, {pipeline_mode = #tpu.pipeline_mode<synchronous>, transform_indices = @transform_3, window_bounds = array<i64: 1, 128>}, {pipeline_mode = #tpu.pipeline_mode<synchronous>, transform_indices = @transform_4, window_bounds = array<i64: 128, 128>}, {transform_indices = @transform_5, window_bounds = array<i64: 128, 128>}]} {
    %c0_i32 = arith.constant 0 : i32
    %0 = arith.cmpi eq, %arg1, %c0_i32 : i32
    %1 = arith.extui %0 : i1 to i32
    %c0_i32_0 = arith.constant 0 : i32
    %2 = arith.cmpi ne, %1, %c0_i32_0 : i32
    scf.if %2 {
      %cst_12 = arith.constant 0.000000e+00 : f32
      %15 = vector.broadcast %cst_12 : f32 to vector<128x128xf32>
      %c0_13 = arith.constant 0 : index
      %c0_14 = arith.constant 0 : index
      %16 = vector.load %arg8[%c0_13, %c0_14] : memref<128x128xf32, #tpu.memory_space<vmem>>, vector<128x128xf32>
      tpu.vector_store %arg8[%c0_13, %c0_14], %15 {strides = array<i32>} : memref<128x128xf32, #tpu.memory_space<vmem>>, vector<128x128xf32>,
    } else {
    }
    %c0 = arith.constant 0 : index
    %c0_1 = arith.constant 0 : index
    %3 = vector.load %arg3[%c0, %c0_1] : memref<128x128xbf16, #tpu.memory_space<vmem>>, vector<128x128xbf16>
    %c0_2 = arith.constant 0 : index
    %c0_3 = arith.constant 0 : index
    %4 = vector.load %arg4[%c0_2, %c0_3] : memref<128x128xbf16, #tpu.memory_space<vmem>>, vector<128x128xbf16>
    %cst = arith.constant dense<0.000000e+00> : vector<128x128xf32>
    %5 = tpu.matmul %3, %4, %cst {dimension_numbers = #tpu.dot_dimension_numbers<[1], [0], [0], [1], [0, 0, 1, 1], [], []>} : vector<128x128xbf16>, vector<128x128xbf16>, vector<128x128xf32> -> vector<128x128xf32>
    %c0_4 = arith.constant 0 : index
    %c0_5 = arith.constant 0 : index
    %6 = vector.load %arg8[%c0_4, %c0_5] : memref<128x128xf32, #tpu.memory_space<vmem>>, vector<128x128xf32>
    %c0_6 = arith.constant 0 : index
    %c0_7 = arith.constant 0 : index
    %7 = vector.load %arg2[%c0_6, %c0_7] : memref<128x128xbf16, #tpu.memory_space<vmem>>, vector<128x128xbf16>
    %8 = arith.truncf %5 : vector<128x128xf32> to vector<128x128xbf16>
    %cst_8 = arith.constant dense<0.000000e+00> : vector<128x128xf32>
    %9 = tpu.matmul %7, %8, %cst_8 {dimension_numbers = #tpu.dot_dimension_numbers<[1], [0], [0], [1], [0, 0, 1, 1], [], []>} : vector<128x128xbf16>, vector<128x128xbf16>, vector<128x128xf32> -> vector<128x128xf32>
    %10 = arith.addf %6, %9 : vector<128x128xf32>
    %c0_9 = arith.constant 0 : index
    %c0_10 = arith.constant 0 : index
    %11 = vector.load %arg8[%c0_9, %c0_10] : memref<128x128xf32, #tpu.memory_space<vmem>>, vector<128x128xf32>
    tpu.vector_store %arg8[%c0_9, %c0_10], %10 {strides = array<i32>} : memref<128x128xf32, #tpu.memory_space<vmem>>, vector<128x128xf32>,
    %c1_i32 = arith.constant 1 : i32
    %12 = arith.cmpi eq, %arg1, %c1_i32 : i32
    %13 = arith.extui %12 : i1 to i32
    %c0_i32_11 = arith.constant 0 : i32
    %14 = arith.cmpi ne, %13, %c0_i32_11 : i32
    scf.if %14 {
      %c0_12 = arith.constant 0 : index
      %c0_13 = arith.constant 0 : index
      %15 = vector.load %arg8[%c0_12, %c0_13] : memref<128x128xf32, #tpu.memory_space<vmem>>, vector<128x128xf32>
      %c0_14 = arith.constant 0 : index
      %c0_15 = arith.constant 0 : index
      %16 = vector.load %arg5[%c0_14, %c0_15] : memref<1x128xf32, #tpu.memory_space<vmem>>, vector<1x128xf32>
      %17 = vector.broadcast %16 : vector<1x128xf32> to vector<128x128xf32>
      %18 = arith.addf %15, %17 : vector<128x128xf32>
      %cst_16 = arith.constant 0.000000e+00 : f32
      %19 = vector.broadcast %cst_16 : f32 to vector<128x128xf32>
      %20 = arith.maximumf %18, %19 : vector<128x128xf32>
      %21 = arith.truncf %20 : vector<128x128xf32> to vector<128x128xbf16>
      %c0_17 = arith.constant 0 : index
      %c0_18 = arith.constant 0 : index
      %22 = vector.load %arg6[%c0_17, %c0_18] : memref<128x128xbf16, #tpu.memory_space<vmem>>, vector<128x128xbf16>
      %cst_19 = arith.constant dense<0.000000e+00> : vector<128x128xf32>
      %23 = tpu.matmul %21, %22, %cst_19 {dimension_numbers = #tpu.dot_dimension_numbers<[1], [0], [0], [1], [0, 0, 1, 1], [], []>} : vector<128x128xbf16>, vector<128x128xbf16>, vector<128x128xf32> -> vector<128x128xf32>
      %24 = arith.truncf %23 : vector<128x128xf32> to vector<128x128xbf16>
      %c0_20 = arith.constant 0 : index
      %c0_21 = arith.constant 0 : index
      %25 = vector.load %arg7[%c0_20, %c0_21] : memref<128x128xbf16, #tpu.memory_space<vmem>>, vector<128x128xbf16>
      tpu.vector_store %arg7[%c0_20, %c0_21], %24 {strides = array<i32>} : memref<128x128xbf16, #tpu.memory_space<vmem>>, vector<128x128xbf16>,
    } else {
    }
    return
  }
  func.func @transform_0(%arg0: i32, %arg1: i32) -> (i32, i32) {
    %c0_i32 = arith.constant 0 : i32
    return %arg0, %arg1 : i32, i32
  }
  func.func @transform_1(%arg0: i32, %arg1: i32) -> (i32, i32) {
    %c0_i32 = arith.constant 0 : i32
    %c0_i32_0 = arith.constant 0 : i32
    return %arg1, %c0_i32 : i32, i32
  }
  func.func @transform_2(%arg0: i32, %arg1: i32) -> (i32, i32) {
    %c0_i32 = arith.constant 0 : i32
    %c0_i32_0 = arith.constant 0 : i32
    %c0_i32_1 = arith.constant 0 : i32
    return %c0_i32, %c0_i32_0 : i32, i32
  }
  func.func @transform_3(%arg0: i32, %arg1: i32) -> (i32, i32) {
    %c0_i32 = arith.constant 0 : i32
    %c0_i32_0 = arith.constant 0 : i32
    %c0_i32_1 = arith.constant 0 : i32
    return %c0_i32, %c0_i32_0 : i32, i32
  }
  func.func @transform_4(%arg0: i32, %arg1: i32) -> (i32, i32) {
    %c0_i32 = arith.constant 0 : i32
    %c0_i32_0 = arith.constant 0 : i32
    %c0_i32_1 = arith.constant 0 : i32
    return %c0_i32, %c0_i32_0 : i32, i32
  }
  func.func @transform_5(%arg0: i32, %arg1: i32) -> (i32, i32) {
    %c0_i32 = arith.constant 0 : i32
    %c0_i32_0 = arith.constant 0 : i32
    return %arg0, %c0_i32 : i32, i32
  }
}

</mosaic_0001>

<bundles_post_ra>
// kernel: tpu_custom_call.1
= control target key start
LH: loop header
LB: loop body
LE: loop exit
PB: predicated region body
PF: predicated region fallthrough
CT: control target
= control target key end

     0   :  { %s2523_s0 = inlined_call_operand.hbm [shape: bf16[256,256], index: 0, kind: input, shape index: {}]   ;;  %s2524_s1 = inlined_call_operand.hbm [shape: bf16[256,128], index: 1, kind: input, shape index: {}]   ;;  %s2525_s2 = inlined_call_operand.hbm [shape: bf16[128,128], index: 2, kind: input, shape index: {}]   ;;  %s2526_s3 = inlined_call_operand.vmem [shape: f32[1,128], index: 3, kind: input, shape index: {}]   ;;  %s2527_s4 = inlined_call_operand.hbm [shape: bf16[128,128], index: 4, kind: input, shape index: {}]   ;;  %s2528_s5 = inlined_call_operand.hbm [shape: bf16[256,128], index: 5, kind: output, shape index: {}]  }
   0x1   :  { %2552 = sst [smem:[#allocation26_spill]] %s2525_s2 }
   0x2   :  { %2553 = sst [smem:[#allocation27_spill]] %s2526_s3 }
   0x3   :  { %2554 = sst [smem:[#allocation28_spill]] %s2527_s4 }
   0x4   :  { %2555 = sst [smem:[#allocation29_spill]] %s2528_s5 }
   0x5   :  { %10 = vsyncpa [#allocation4], 0 }
   0x6   :  { %12 = vsyncpa [#allocation4 + $0x1], 0 }
   0x7   :  { %13 = vsyncpa [#allocation7], 0 }
   0x8   :  { %15 = vsyncpa [#allocation7 + $0x1], 0 }
   0x9   :  { %16 = vsyncpa [#allocation10], 0 }
   0xa   :  { %17 = vsyncpa [#allocation5], 0 }
   0xb   :  { %19 = vsyncpa [#allocation5 + $0x1], 0  ;;  %s2052_s18 = smov 0   ;;  %s2054_s19 = smov 0  }
   0xc   :  { %s2056_s20 = smov 0   ;;  %s2058_s21 = smov 0  }
   0xd   :  { %s2060_s22 = smov 0   ;;  %s2062_s23 = smov 0  }
   0xe   :  { %s2064_s24 = smov 0   ;;  %s2066_s25 = smov 0  }
   0xf   :  { %s2068_s26 = smov 0   ;;  %s2070_s27 = smov 0  }
  0x10   :  { %s2072_s28 = smov 0   ;;  %s2074_s29 = smov 0  }
  0x11   :  { %s2076_s30 = smov 0   ;;  %s2078_s6 = smov 0  }
  0x12 LB: > { %2556 = sst [smem:[#allocation17_spill]] %s1957_s18  ;;  %s2119_s7 = sadd.s32 4294967295, %s2009_s6   ;;  %s2009_s6 = sphi %s2078_s6, %s25_s6   ;;  %s2005_s30 = sphi %s2076_s30, %s2618_s30   ;;  %s2001_s29 = sphi %s2074_s29, %s2617_s29   ;;  %s1997_s28 = sphi %s2072_s28, %s2616_s28   ;;  %s1993_s27 = sphi %s2070_s27, %s2615_s27   ;;  %s1989_s26 = sphi %s2068_s26, %s2614_s26   ;;  %s1985_s25 = sphi %s2066_s25, %s2613_s25   ;;  %s1981_s24 = sphi %s2064_s24, %s2612_s24   ;;  %s1977_s23 = sphi %s2062_s23, %s2611_s23   ;;  %s1973_s22 = sphi %s2060_s22, %s2610_s22   ;;  %s1969_s21 = sphi %s2058_s21, %s2609_s21   ;;  %s1965_s20 = sphi %s2056_s20, %s2608_s20   ;;  %s1961_s19 = sphi %s2054_s19, %s2607_s19   ;;  %s1957_s18 = sphi %s2052_s18, %s2606_s18  }
  0x13   : > { %2557 = sst [smem:[#allocation18_spill]] %s1961_s19  ;;  %s1245_s8 = sadd.s32 4294967294, %s2009_s6  }
  0x14   : > { %2558 = sst [smem:[#allocation19_spill]] %s1993_s27  ;;  %p59_p0 = scmp.ne.s32.totalorder %s1985_s25, %s1981_s24 }
  0x15   : > { %2559 = sst [smem:[#allocation20_spill]] %s1997_s28  ;;  %p2534_p1 = scmp.eq.s32.totalorder %s2119_s7, 0 }
  0x16   : > { %2560 = sst [smem:[#allocation21_spill]] %s2119_s7  ;;  %p85_p2 = scmp.ne.s32.totalorder %s1973_s22, %s1969_s21 }
  0x17   : > { %p2128_p3 = por %p2534_p1, %p59_p0  ;;  %p171_p4 = scmp.ne.s32.totalorder %s1965_s20, %s1961_s19 }
  0x18   : > { %p2136_p5 = por %p85_p2, %p2534_p1  ;;  %p172_p6 = scmp.eq.s32.totalorder %s2119_s7, 3 }
  0x19   : > { %s2561_s10 = scalar_select %p2128_p3, 1, 0 }
  0x1a   : > { %s2562_s11 = scalar_select %p2136_p5, 1, 0 }
  0x1b   : > { %p177_p7 = scmp.ne.s32.totalorder %s1961_s19, %s1957_s18  ;;  %p178_p8 = scmp.eq.s32.totalorder %s1245_s8, 3 }
  0x1c   : > { %2563 = sst [smem:[#allocation22_spill]] %s2562_s11  ;;  %p2143_p9 = por %p172_p6, %p171_p4 }
  0x1d   : > { %p1246_p10 = scmp.ge.s32.totalorder %s2009_s6, 1  ;;  %p2148_p11 = por %p178_p8, %p177_p7 }
  0x1e   : > { %s2564_s12 = scalar_select %p2143_p9, 1, 0 }
  0x1f   : > { %s2566_s13 = scalar_select %p2148_p11, 1, 0 }
  0x20   : > { %2565 = sst [smem:[#allocation23_spill]] %s2564_s12  ;;  %p185_p12 = scmp.lt.s32.totalorder %s2009_s6, 5 }
  0x21   : > { %2567 = sst [smem:[#allocation24_spill]] %s2566_s13  ;;  %s2011_s15 = smov [#allocation8]  }
  0x22   : > { %p2153_p13 = pnand %p1246_p10, %p185_p12  ;;  %s197_s16 = sshll.u32 %s2011_s15, 4  ;;  %s198_s16 = int_to_ptr.vmem [resolvable:$true] %s197_s16 }
  0x23   : > { %s2012_s21 = smov [#allocation9]   ;;  %s2570_s2 = sld [smem:[#allocation26_spill]] }
  0x24   : > { %s2568_s14 = scalar_select %p2153_p13, 1, 0 }
  0x25   : > { %p1559_p0 = pneg %p2153_p13  ;;  %s213_s24 = sshll.u32 %s2012_s21, 4  ;;  %s2165_s24 = int_to_ptr.vmem [resolvable:$true] %s213_s24 }
  0x27   : > { %p2161_p2 = pnand %p1559_p0, %p2534_p1 }
  0x29   : > { %s1735_s13 = scalar_lea.hbm %s2570_s2, 1024  ;;  %p1737_p6 = pneg %p2161_p2 }
  0x2a   : > { %p1736_p4 = scmp.ne.s32.totalorder %s2570_s2, %s1735_s13  ;;  %p1742_p10 = scmp.lt.u32.totalorder %s1735_s13, %s2570_s2 }
  0x2c   : > { %p1738_p7 = pnand %p1737_p6, %p1736_p4 }
  0x2e   : > { %p1739_p8 = pneg %p1738_p7 }
  0x30   : > { %p1744_p12 = pnand %p1742_p10, %p1739_p8 }
  0x32   : > { %1747 = shalt.err (!%p1744_p12)
}
  0x33   : > { %s1748_s21 = scalar_lea.vmem %s198_s16, 1024  ;;  %p1756_p9 = scmp.lt.s32.totalorder %s198_s16, %s198_s16 }
  0x34   : > { %p1749_p0 = scmp.ne.s32.totalorder %s198_s16, %s1748_s21  ;;  %p1757_p5 = scmp.lt.s32.totalorder %s1748_s21, %s1748_s21 }
  0x36   : > { %p1751_p1 = pnand %p1749_p0, %p1737_p6  ;;  %p1758_p3 = por %p1757_p5, %p1756_p9 }
  0x38   : > { %p1752_p11 = pneg %p1751_p1 }
  0x3a   : > { %p1759_p13 = pnand %p1758_p3, %p1752_p11 }
  0x3c   : > { %1762 = shalt.err (!%p1759_p13)
}
  0x3d   : > { %s2539_s18 = smov 64   ;;  %s2541_s9 = smov 4  }
  0x3e   : > { %1562 = dma.hbm_to_vmem [thread:$0]  (!%p2161_p2), %s2570_s2, 1024, %s198_s16, [#allocation7], %s2539_s18, %s2539_s18, %s2541_s9  }
  0x3f   : > { %s2571_s4 = sld [smem:[#allocation28_spill]] }
  0x45   : > { %s1763_s15 = scalar_lea.hbm %s2571_s4, 1024 }
  0x46   : > { %p1764_p1 = scmp.ne.s32.totalorder %s2571_s4, %s1763_s15  ;;  %p1770_p9 = scmp.lt.u32.totalorder %s1763_s15, %s2571_s4 }
  0x48   : > { %p1766_p3 = pnand %p1764_p1, %p1737_p6 }
  0x4a   : > { %p1767_p5 = pneg %p1766_p3 }
  0x4c   : > { %p1772_p11 = pnand %p1770_p9, %p1767_p5 }
  0x4e   : > { %1775 = shalt.err (!%p1772_p11)
}
  0x4f   : > { %s1776_s16 = scalar_lea.vmem %s2165_s24, 1024  ;;  %p1784_p8 = scmp.lt.s32.totalorder %s2165_s24, %s2165_s24 }
  0x50   : > { %p1777_p13 = scmp.ne.s32.totalorder %s2165_s24, %s1776_s16  ;;  %p1785_p10 = scmp.lt.s32.totalorder %s1776_s16, %s1776_s16 }
  0x52   : > { %p1779_p4 = pnand %p1777_p13, %p1737_p6  ;;  %p1786_p12 = por %p1785_p10, %p1784_p8 }
  0x54   : > { %p1780_p7 = pneg %p1779_p4 }
  0x56   : > { %p1787_p0 = pnand %p1786_p12, %p1780_p7 }
  0x58   : > { %1790 = shalt.err (!%p1787_p0)
}
  0x59   : > { %1565 = dma.hbm_to_vmem [thread:$0]  (!%p2161_p2), %s2571_s4, 1024, %s2165_s24, [#allocation10], %s2539_s18, %s2539_s18, %s2541_s9  }
  0x5a   : > { %s34_s28 = sadd.s32 1, %s2001_s29  ;;  %s37_s17 = sadd.s32 1, %s2005_s30 }
  0x5b   : > { %p35_p6 = scmp.ge.s32.totalorder %s34_s28, 2  ;;  %s46_s5 = sadd.s32 1, %s1989_s26 }
  0x5c   : > { %p53_p1 = scmp.ne.s32.totalorder %s1989_s26, %s1985_s25  ;;  %p2551_p3 = scmp.eq.s32.totalorder %s2009_s6, 0 }
  0x5d   : > { %s2620_s28 = smov (%p35_p6, %s34_s28), 0  ;;  %s2622_s17 = smov (!%p35_p6, %s37_s17), %s2005_s30 }
  0x5e   : > { %2572 = sst [smem:[#allocation25_spill]] %s2620_s28  ;;  %s2231_s12 = ssub.s32 %s2001_s29, %s2620_s28 }
  0x5f   : > { %p2235_p2 = por %p2551_p3, %p53_p1  ;;  %p39_p5 = scmp.ge.s32.totalorder %s2622_s17, 2 }
  0x60   : > { %p70_p9 = scmp.eq.s32.totalorder %s2231_s12, 0  ;;  %p2550_p11 = scmp.lt.s32.totalorder %s2009_s6, 4 }
  0x61   : > { %s227_s13 = sand.u32 1, %s1989_s26   ;;  %s2624_s17 = smov (%p39_p5, %s2622_s17), 0 }
  0x62   : > { %s1250_s8 = sshll.u32 %s227_s13, 6  ;;  %s41_s15 = ssub.s32 %s2005_s30, %s2624_s17 }
  0x63   : > { %s43_s21 = sor.u32 %s2231_s12, %s41_s15  ;;  %p159_p13 = scmp.eq.s32.totalorder %s41_s15, 0 }
  0x64   : > { %p44_p4 = scmp.eq.s32.totalorder %s43_s21, 0  ;;  %s1319_s16 = sshll.u32 %s2005_s30, 5 }
  0x65   : > { %s2574_s3 = sadd.s32 1, %s1965_s20  ;;  %s237_s9 = sadd.s32 %s2001_s29, %s1319_s16 }
  0x66   : > { %s2251_s27 = scalar_select %p159_p13, %s1965_s20, %s2574_s3  }
  0x67   : > { %s2254_s18 = scalar_select %p44_p4, %s1989_s26, %s46_s5  }
  0x68   : > { %s231_s2 = scalar_lea.vmem [#allocation3], %s1250_s8  ;;  %s1253_s28 = sshll.u32 %s237_s9, 6 }
  0x69   : > { %s240_s4 = sshll.u32 %s231_s2, 4  ;;  %s2262_s7 = scalar_lea.hbm %s2523_s0, %s1253_s28  ;;  %s2257_s4 = int_to_ptr.vmem [resolvable:$true] %s240_s4 }
  0x6a   : > { %p2268_p7 = pnand %p2550_p11, %p2235_p2  ;;  %s2272_s2 = scalar_lea.sflag [#allocation4], %s227_s13 }
  0x6b   : > { %s1791_s9 = scalar_lea.hbm %s2262_s7, 1024  ;;  %s1796_s28 = scalar_lea.hbm %s2523_s0, 4096 }
  0x6c   : > { %p1792_p8 = scmp.ne.s32.totalorder %s2262_s7, %s1791_s9  ;;  %p1793_p10 = pneg %p2268_p7 }
  0x6d   : > { %p1797_p6 = scmp.lt.u32.totalorder %s2262_s7, %s2523_s0  ;;  %p1798_p1 = scmp.lt.u32.totalorder %s1796_s28, %s1791_s9 }
  0x6e   : > { %p1794_p12 = pnand %p1793_p10, %p1792_p8  ;;  %p1800_p5 = scmp.lt.u32.totalorder %s1791_s9, %s2262_s7 }
  0x6f   : > { %p1799_p2 = por %p1798_p1, %p1797_p6 }
  0x70   : > { %p1795_p0 = pneg %p1794_p12 }
  0x71   : > { %p1801_p13 = por %p1800_p5, %p1799_p2 }
  0x73   : > { %p1802_p4 = pnand %p1801_p13, %p1795_p0 }
  0x75   : > { %1805 = shalt.err (!%p1802_p4)
}
  0x76   : > { %s1806_s13 = scalar_lea.vmem %s2257_s4, 1024  ;;  %s2015_s15 = smov [#allocation3]  }
  0x77   : > { %p1807_p8 = scmp.ne.s32.totalorder %s2257_s4, %s1806_s13  ;;  %s1811_s21 = sshll.u32 %s2015_s15, 4  ;;  %s1812_s21 = int_to_ptr.vmem [resolvable:$false] %s1811_s21 }
  0x78   : > { %s1813_s16 = scalar_lea.vmem %s1812_s21, 2048  ;;  %p1814_p3 = scmp.lt.s32.totalorder %s2257_s4, %s1812_s21 }
  0x79   : > { %p1809_p12 = pnand %p1807_p8, %p1793_p10  ;;  %p1815_p6 = scmp.lt.s32.totalorder %s1813_s16, %s1806_s13 }
  0x7b   : > { %p1810_p11 = pneg %p1809_p12  ;;  %p1816_p1 = por %p1815_p6, %p1814_p3 }
  0x7d   : > { %p1817_p2 = pnand %p1816_p1, %p1810_p11 }
  0x7f   : > { %1820 = shalt.err (!%p1817_p2)
}
  0x80   : > { %s2016_s3 = smov 128   ;;  %s2576_s9 = smov 4  }
  0x81   : > { %s2577_s19 = smov 64   ;;  %s72_s11 = sadd.s32 1, %s1977_s23 }
  0x82   : > { %1569 = dma.hbm_to_vmem [thread:$0]  (!%p2268_p7), %s2262_s7, 1024, %s2257_s4, %s2272_s2, %s2016_s3, %s2577_s19, %s2576_s9  }
  0x83   : > { %p79_p3 = scmp.ne.s32.totalorder %s1977_s23, %s1973_s22  ;;  %p2578_p11 = scmp.eq.s32.totalorder %s2009_s6, 0 }
  0x84   : > { %s2308_s5 = scalar_select %p70_p9, %s1977_s23, %s72_s11  }
  0x85   : > { %p81_p10 = por %p79_p3, %p2578_p11  ;;  %s250_s28 = sand.u32 1, %s2009_s6  }
  0x86   : > { %s252_s24 = sand.u32 1, %s1977_s23   ;;  %s1320_s13 = sshll.u32 %s2001_s29, 10 }
  0x87   : > { %s1254_s8 = sshll.u32 %s252_s24, 6  ;;  %s2318_s16 = scalar_lea.hbm %s2524_s1, %s1320_s13 }
  0x88   : > { %s254_s4 = scalar_lea.vmem [#allocation6], %s1254_s8  ;;  %p2579_p7 = scmp.lt.s32.totalorder %s2009_s6, 4 }
  0x89   : > { %s261_s7 = sshll.u32 %s254_s4, 4  ;;  %s2328_s2 = scalar_lea.sflag [#allocation7], %s250_s28  ;;  %s2326_s7 = int_to_ptr.vmem [resolvable:$true] %s261_s7 }
  0x8a   : > { %p2322_p9 = pnand %p2579_p7, %p81_p10  ;;  %s1821_s3 = scalar_lea.hbm %s2318_s16, 1024 }
  0x8b   : > { %p1822_p0 = scmp.ne.s32.totalorder %s2318_s16, %s1821_s3  ;;  %s1826_s8 = scalar_lea.hbm %s2524_s1, 2048 }
  0x8c   : > { %p1823_p5 = pneg %p2322_p9  ;;  %p1827_p8 = scmp.lt.u32.totalorder %s2318_s16, %s2524_s1 }
  0x8d   : > { %p1828_p12 = scmp.lt.u32.totalorder %s1826_s8, %s1821_s3  ;;  %p1830_p1 = scmp.lt.u32.totalorder %s1821_s3, %s2318_s16 }
  0x8e   : > { %p1824_p13 = pnand %p1823_p5, %p1822_p0 }
  0x8f   : > { %p1829_p6 = por %p1828_p12, %p1827_p8 }
  0x90   : > { %p1825_p4 = pneg %p1824_p13 }
  0x91   : > { %p1831_p2 = por %p1830_p1, %p1829_p6 }
  0x93   : > { %p1832_p3 = pnand %p1831_p2, %p1825_p4 }
  0x95   : > { %1835 = shalt.err (!%p1832_p3)
}
  0x96   : > { %s1836_s28 = scalar_lea.vmem %s2326_s7, 1024  ;;  %s2017_s21 = smov [#allocation6]  }
  0x97   : > { %p1837_p11 = scmp.ne.s32.totalorder %s2326_s7, %s1836_s28  ;;  %s1841_s4 = sshll.u32 %s2017_s21, 4  ;;  %s1842_s4 = int_to_ptr.vmem [resolvable:$false] %s1841_s4 }
  0x98   : > { %s1843_s11 = scalar_lea.vmem %s1842_s4, 2048  ;;  %p1844_p0 = scmp.lt.s32.totalorder %s2326_s7, %s1842_s4 }
  0x99   : > { %p1839_p10 = pnand %p1837_p11, %p1823_p5  ;;  %p1845_p13 = scmp.lt.s32.totalorder %s1843_s11, %s1836_s28 }
  0x9b   : > { %p1840_p7 = pneg %p1839_p10  ;;  %p1846_p8 = por %p1845_p13, %p1844_p0 }
  0x9d   : > { %p1847_p12 = pnand %p1846_p8, %p1840_p7 }
  0x9f   : > { %1850 = shalt.err (!%p1847_p12)
}
  0xa0   : > { %1572 = dma.hbm_to_vmem [thread:$0]  (!%p2322_p9), %s2318_s16, 1024, %s2326_s7, %s2328_s2, %s2577_s19, %s2577_s19, %s2576_s9  }
  0xa1   : > { %p2581_p5 = scmp.ne.s32.totalorder %s2568_s14, 0 }
  0xa2   : > { %s275_s3 = sand.u32 (!%p2581_p5), 1, %s1985_s25   ;;  %p2582_p4 = scmp.ne.s32.totalorder (!%p2581_p5), %s2561_s10, 0 }
  0xa3   : > { %273 = sbr.rel (%p2581_p5) target bundleno = 987 (0x3db), region = 40  ;;  %s1258_s24 = sshll.u32 (!%p2581_p5), %s275_s3, 6 }
  0xa4   : > { %s276_s8 = scalar_lea.sflag (!%p2581_p5), [#allocation4], %s275_s3  ;;  %s2362_s13 = scalar_lea.vmem (!%p2581_p5), [#allocation3], %s1258_s24 }
  0xaa   : > { %1936 = dma.done.wait (%p2582_p4), %s276_s8, 1024  }
  0xab   : > { %1938 = vsyncadd (%p2582_p4), %s276_s8, 4294966272  ;;  %s2583_s12 = sld [smem:[#allocation21_spill]]  ;;  %s2584_s15 = sld [smem:[#allocation22_spill]] }
  0xac   : > { %s286_s9 = sand.u32 1, %s1973_s22  }
  0xad   : > { %s1259_s19 = sshll.u32 %s286_s9, 6 }
  0xae   : > { %s2370_s16 = scalar_lea.vmem [#allocation6], %s1259_s19 }
  0xb1   : > { %s284_s28 = sand.u32 1, %s2583_s12   ;;  %p2585_p9 = scmp.ne.s32.totalorder %s2584_s15, 0 }
  0xb2   : > { %s285_s14 = scalar_lea.sflag [#allocation7], %s284_s28 }
  0xb3   : > { %1940 = dma.done.wait (%p2585_p9), %s285_s14, 1024  }
  0xb4   : > { %1942 = vsyncadd (%p2585_p9), %s285_s14, 4294966272  ;;  %p2586_p6 = scmp.eq.s32.totalorder %s2583_s12, 0 }
  0xb6   : > { %1944 = dma.done.wait (%p2586_p6), [#allocation7], 1024   ;;  %p2587_p1 = pmov %p2586_p6 }
  0xb8   : > { %1946 = vsyncadd (%p2587_p1), [#allocation7], 4294966272  ;;  %p2588_p2 = pmov %p2587_p1 }
  0xb9   : > { %p2589_p3 = pmov %p2587_p1 }
  0xba   : > { %1948 = dma.done.wait (%p2588_p2), [#allocation10], 1024  }
  0xbb   : > { %1950 = vsyncadd (%p2589_p3), [#allocation10], 4294966272  ;;  %s2590_s10 = sld [smem:[#allocation18_spill]]  ;;  %s2591_s4 = sld [smem:[#allocation19_spill]] }
  0xc1   : > { %s325_s7 = sand.u32 1, %s2590_s10   ;;  %p1263_p11 = scmp.ne.s32.totalorder %s2591_s4, 0 }
  0xc2   : > { %s1262_s2 = sshll.u32 %s325_s7, 6  ;;  %v2018_v0 = vmov (!%p1263_p11), 0.0  }
  0xc3   : > { %s2387_s21 = scalar_lea.vmem [#allocation11], %s1262_s2  ;;  %335 = sbr.rel (%p1263_p11) target bundleno = 203 (0xcb), region = 60  ;;  %336 = vst [vmem:[#allocation2] sm:$0xff] (!%p1263_p11), %v2018_v0  ;;  %337 = vst [vmem:[#allocation2 + $0x8] sm:$0xff] (!%p1263_p11), %v2018_v0 }
  0xc4   : > { %338 = vst [vmem:[#allocation2 + $0x10] sm:$0xff] (!%p1263_p11), %v2018_v0  ;;  %339 = vst [vmem:[#allocation2 + $0x18] sm:$0xff] (!%p1263_p11), %v2018_v0 }
  0xc5   : > { %340 = vst [vmem:[#allocation2 + $0x20] sm:$0xff] (!%p1263_p11), %v2018_v0  ;;  %341 = vst [vmem:[#allocation2 + $0x28] sm:$0xff] (!%p1263_p11), %v2018_v0 }
  0xc6   : > { %342 = vst [vmem:[#allocation2 + $0x30] sm:$0xff] (!%p1263_p11), %v2018_v0  ;;  %343 = vst [vmem:[#allocation2 + $0x38] sm:$0xff] (!%p1263_p11), %v2018_v0 }
  0xc7   : > { %344 = vst [vmem:[#allocation2 + $0x40] sm:$0xff] (!%p1263_p11), %v2018_v0  ;;  %345 = vst [vmem:[#allocation2 + $0x48] sm:$0xff] (!%p1263_p11), %v2018_v0 }
  0xc8   : > { %346 = vst [vmem:[#allocation2 + $0x50] sm:$0xff] (!%p1263_p11), %v2018_v0  ;;  %347 = vst [vmem:[#allocation2 + $0x58] sm:$0xff] (!%p1263_p11), %v2018_v0 }
  0xc9   : > { %348 = vst [vmem:[#allocation2 + $0x60] sm:$0xff] (!%p1263_p11), %v2018_v0  ;;  %349 = vst [vmem:[#allocation2 + $0x68] sm:$0xff] (!%p1263_p11), %v2018_v0 }
  0xca   : > { %350 = vst [vmem:[#allocation2 + $0x70] sm:$0xff] %v2018_v0  ;;  %351 = vst [vmem:[#allocation2 + $0x78] sm:$0xff] %v2018_v0 }
  0xcb PF: > { %v1703_v1 = vld [vmem:[#allocation8] sm:$0xff]   ;;  %v1704_v2 = vld [vmem:[#allocation8 + $0x8] sm:$0xff]   ;;  %v1705_v3 = vld [vmem:[#allocation8 + $0x10] sm:$0xff]   ;;  %s2592_s11 = sld [smem:[#allocation19_spill]] }
  0xcc   : > { %1433 = vmatprep.subr.bf16.mxu0 %v1703_v1  ;;  %v1706_v4 = vld [vmem:[#allocation8 + $0x18] sm:$0xff]   ;;  %v1711_v5 = vld [vmem:[%s2370_s16] sm:$0xff]   ;;  %v1708_v7 = vld [vmem:[#allocation8 + $0x28] sm:$0xff]  }
  0xcd   : > { %1434 = vmatpush3.bf16.msra.mxu0 %v1703_v1  ;;  %1449 = vmatprep.mubr.bf16.mxu0 %v1711_v5  ;;  %v1707_v6 = vld [vmem:[#allocation8 + $0x20] sm:$0xff]   ;;  %v1709_v8 = vld [vmem:[#allocation8 + $0x30] sm:$0xff]   ;;  %v1710_v9 = vld [vmem:[#allocation8 + $0x38] sm:$0xff]  }
  0xce   : > { %1435 = vmatprep.subr.bf16.mxu0 %v1704_v2  ;;  %v1712_v10 = vld [vmem:[%s2370_s16 + $0x8] sm:$0xff]   ;;  %v1713_v11 = vld [vmem:[%s2370_s16 + $0x10] sm:$0xff]   ;;  %v1714_v12 = vld [vmem:[%s2370_s16 + $0x18] sm:$0xff]  }
  0xcf   : > { %v1715_v13 = vld [vmem:[%s2370_s16 + $0x20] sm:$0xff]   ;;  %v1716_v14 = vld [vmem:[%s2370_s16 + $0x28] sm:$0xff]   ;;  %v1717_v15 = vld [vmem:[%s2370_s16 + $0x30] sm:$0xff]  }
  0xd0   : > { %v1718_v16 = vld [vmem:[%s2370_s16 + $0x38] sm:$0xff]   ;;  %v1719_v17 = vld [vmem:[%s2362_s13] sm:$0xff]   ;;  %v1720_v42 = vld [vmem:[%s2362_s13 + $0x8] sm:$0xff]  }
  0xd1   : > { %1436 = vmatpush3.bf16.msra.mxu0 %v1704_v2  ;;  %1481 = vmatprep.mubr.bf16.mxu1 %v1719_v17  ;;  %v1721_v43 = vld [vmem:[%s2362_s13 + $0x10] sm:$0xff]   ;;  %v1722_v44 = vld [vmem:[%s2362_s13 + $0x18] sm:$0xff]   ;;  %v1723_v45 = vld [vmem:[%s2362_s13 + $0x20] sm:$0xff]   ;;  %p1288_p10 = scmp.ne.s32.totalorder %s2592_s11, 1 }
  0xd2   : > { %1437 = vmatprep.subr.bf16.mxu0 %v1705_v3  ;;  %v1724_v46 = vld [vmem:[%s2362_s13 + $0x28] sm:$0xff]   ;;  %v1725_v47 = vld [vmem:[%s2362_s13 + $0x30] sm:$0xff]   ;;  %v1726_v48 = vld [vmem:[%s2362_s13 + $0x38] sm:$0xff]   ;;  %s2593_s8 = sld [smem:[#allocation27_spill]] (!%p1288_p10) }
  0xd3   : > { %v579_v49 = vld [vmem:[#allocation2 + $0x10] sm:$0xff]  ;;  %v577_v50 = vld [vmem:[#allocation2] sm:$0xff]  ;;  %v580_v52 = vld [vmem:[#allocation2 + $0x18] sm:$0xff] }
  0xd4   : > { %v578_v55 = vld [vmem:[#allocation2 + $0x8] sm:$0xff]  ;;  %v583_v61 = vld [vmem:[#allocation2 + $0x30] sm:$0xff]  ;;  %v581_v62 = vld [vmem:[#allocation2 + $0x20] sm:$0xff] }
  0xd5   : > { %1438 = vmatpush3.bf16.msra.mxu0 %v1705_v3  ;;  %v584_v0 = vld [vmem:[#allocation2 + $0x38] sm:$0xff]  ;;  %v582_v3 = vld [vmem:[#allocation2 + $0x28] sm:$0xff] }
  0xd6   : > { %1439 = vmatprep.subr.bf16.mxu0 %v1706_v4 }
  0xd9   : > { %1440 = vmatpush3.bf16.msra.mxu0 %v1706_v4 }
  0xda   : > { %1441 = vmatprep.subr.bf16.mxu0 %v1707_v6 }
  0xdd   : > { %1442 = vmatpush3.bf16.msra.mxu0 %v1707_v6 }
  0xde   : > { %1443 = vmatprep.subr.bf16.mxu0 %v1708_v7 }
  0xe1   : > { %1444 = vmatpush3.bf16.msra.mxu0 %v1708_v7 }
  0xe2   : > { %1445 = vmatprep.subr.bf16.mxu0 %v1709_v8 }
  0xe5   : > { %1446 = vmatpush3.bf16.msra.mxu0 %v1709_v8 }
  0xe6   : > { %1447 = vmatprep.subr.bf16.mxu0 %v1710_v9 }
  0xe9   : > { %1448 = vmatpush3.bf16.msra.mxu0 %v1710_v9  ;;  %v587_v9 = vld [vmem:[#allocation2 + $0x50] sm:$0xff] }
  0xec   : > { %1450 = vmatmul.mubr.bf16.vlgmr.msra.gmra.mrb[0].mxu0 %v1712_v10  ;;  %v585_v10 = vld [vmem:[#allocation2 + $0x40] sm:$0xff] }
  0xed   : > { %1453 = vmatprep.mubr.bf16.mxu0 %v1713_v11 }
  0xf4   : > { %1454 = vmatmul.mubr.bf16.gmra.mrb[4].mxu0 %v1714_v12  ;;  %v588_v12 = vld [vmem:[#allocation2 + $0x58] sm:$0xff] }
  0xf5   : > { %1457 = vmatprep.mubr.bf16.mxu0 %v1715_v13 }
  0xfc   : > { %1458 = vmatmul.mubr.bf16.gmra.mrb[8].mxu0 %v1716_v14 }
  0xfd   : > { %1461 = vmatprep.mubr.bf16.mxu0 %v1717_v15  ;;  %v586_v15 = vld [vmem:[#allocation2 + $0x48] sm:$0xff] }
 0x104   : > { %1462 = vmatmul.mubr.bf16.gmra.mrb[12].mxu0 %v1718_v16 }
 0x1bf   : > { %v1451_v18 = vpop.f32.mrb[0].mxu0 }
 0x1c0   : > { %v514_v19 = vpop.f32.mrb[1].mxu0 }
 0x1c1   : > { %v1452_v20 = vpop.f32.mrb[2].mxu0 }
 0x1c2   : > { %v610_v21 = vpack.c.bf16 %v1452_v20, %v1451_v18  ;;  %v517_v22 = vpop.f32.mrb[3].mxu0 }
 0x1c3   : > { %v609_v23 = vpack.c.bf16 %v517_v22, %v514_v19  ;;  %v589_v22 = vld [vmem:[#allocation2 + $0x60] sm:$0xff] }
 0x1c5   : > { %1465 = vmatprep.subr.bf16.mxu1 %v609_v23 }
 0x1c6   : > { %1466 = vmatpush3.bf16.msra.mxu1 %v609_v23 }
 0x1c7   : > { %v1455_v24 = vpop.f32.mrb[4].mxu0  ;;  %1467 = vmatprep.subr.bf16.mxu1 %v610_v21 }
 0x1c8   : > { %v530_v25 = vpop.f32.mrb[5].mxu0 }
 0x1c9   : > { %v1456_v26 = vpop.f32.mrb[6].mxu0 }
 0x1ca   : > { %v612_v27 = vpack.c.bf16 %v1456_v26, %v1455_v24  ;;  %v533_v28 = vpop.f32.mrb[7].mxu0  ;;  %1468 = vmatpush3.bf16.msra.mxu1 %v610_v21  ;;  %v591_v21 = vld [vmem:[#allocation2 + $0x70] sm:$0xff]  ;;  %v592_v24 = vld [vmem:[#allocation2 + $0x78] sm:$0xff] }
 0x1cb   : > { %v611_v29 = vpack.c.bf16 %v533_v28, %v530_v25 }
 0x1cd   : > { %1469 = vmatprep.subr.bf16.mxu1 %v611_v29 }
 0x1ce   : > { %1470 = vmatpush3.bf16.msra.mxu1 %v611_v29 }
 0x1cf   : > { %v1459_v30 = vpop.f32.mrb[8].mxu0  ;;  %1471 = vmatprep.subr.bf16.mxu1 %v612_v27 }
 0x1d0   : > { %v546_v31 = vpop.f32.mrb[9].mxu0 }
 0x1d1   : > { %v1460_v32 = vpop.f32.mrb[10].mxu0 }
 0x1d2   : > { %v614_v33 = vpack.c.bf16 %v1460_v32, %v1459_v30  ;;  %v549_v34 = vpop.f32.mrb[11].mxu0  ;;  %1472 = vmatpush3.bf16.msra.mxu1 %v612_v27  ;;  %v590_v27 = vld [vmem:[#allocation2 + $0x68] sm:$0xff] }
 0x1d3   : > { %v613_v35 = vpack.c.bf16 %v549_v34, %v546_v31  ;;  %v1728_v34 = vld [vmem:[#allocation9 + $0x8] sm:$0xff] (!%p1288_p10)  }
 0x1d5   : > { %1473 = vmatprep.subr.bf16.mxu1 %v613_v35 }
 0x1d6   : > { %1474 = vmatpush3.bf16.msra.mxu1 %v613_v35  ;;  %v1729_v35 = vld [vmem:[#allocation9 + $0x10] sm:$0xff] (!%p1288_p10)  }
 0x1d7   : > { %v1463_v36 = vpop.f32.mrb[12].mxu0  ;;  %1475 = vmatprep.subr.bf16.mxu1 %v614_v33 }
 0x1d8   : > { %v562_v37 = vpop.f32.mrb[13].mxu0 }
 0x1d9   : > { %v1464_v38 = vpop.f32.mrb[14].mxu0 }
 0x1da   : > { %v616_v39 = vpack.c.bf16 %v1464_v38, %v1463_v36  ;;  %v565_v40 = vpop.f32.mrb[15].mxu0  ;;  %1476 = vmatpush3.bf16.msra.mxu1 %v614_v33  ;;  %v1727_v33 = vld [vmem:[#allocation9] sm:$0xff] (!%p1288_p10)   ;;  %v1730_v36 = vld [vmem:[#allocation9 + $0x18] sm:$0xff] (!%p1288_p10)  }
 0x1db   : > { %v615_v41 = vpack.c.bf16 %v565_v40, %v562_v37  ;;  %1497 = vmatprep.subr.bf16.mxu0 (!%p1288_p10), %v1727_v33 }
 0x1dc   : > { %1498 = vmatpush3.bf16.msra.mxu0 (!%p1288_p10), %v1727_v33 }
 0x1dd   : > { %1477 = vmatprep.subr.bf16.mxu1 %v615_v41  ;;  %1499 = vmatprep.subr.bf16.mxu0 (!%p1288_p10), %v1728_v34 }
 0x1de   : > { %1478 = vmatpush3.bf16.msra.mxu1 %v615_v41 }
 0x1df   : > { %1479 = vmatprep.subr.bf16.mxu1 %v616_v39 }
 0x1e0   : > { %1500 = vmatpush3.bf16.msra.mxu0 (!%p1288_p10), %v1728_v34 }
 0x1e1   : > { %1501 = vmatprep.subr.bf16.mxu0 (!%p1288_p10), %v1729_v35 }
 0x1e2   : > { %1480 = vmatpush3.bf16.msra.mxu1 %v616_v39  ;;  %v2410_v39 = vld [vmem:[%s2593_s8] ss:$0 sm:$0xff] (!%p1288_p10) }
 0x1e3   : > { %1529 = vmatprep.subr.bf16.mxu1 (!%p1288_p10), %v1727_v33 }
 0x1e4   : > { %1502 = vmatpush3.bf16.msra.mxu0 (!%p1288_p10), %v1729_v35 }
 0x1e5   : > { %1482 = vmatmul.mubr.bf16.vlgmr.msra.gmra.mrb[0].mxu1 %v1720_v42  ;;  %1503 = vmatprep.subr.bf16.mxu0 (!%p1288_p10), %v1730_v36 }
 0x1e6   : > { %1485 = vmatprep.mubr.bf16.mxu1 %v1721_v43  ;;  %1537 = vmatpush3.bf16.msra.mxu1 (!%p1288_p10), %v1727_v33 }
 0x1e7   : > { %1530 = vmatprep.subr.bf16.mxu1 (!%p1288_p10), %v1728_v34 }
 0x1e8   : > { %1504 = vmatpush3.bf16.msra.mxu0 (!%p1288_p10), %v1730_v36 }
 0x1ea   : > { %1538 = vmatpush3.bf16.msra.mxu1 (!%p1288_p10), %v1728_v34 }
 0x1eb   : > { %1531 = vmatprep.subr.bf16.mxu1 (!%p1288_p10), %v1729_v35 }
 0x1ed   : > { %1486 = vmatmul.mubr.bf16.gmra.mrb[4].mxu1 %v1722_v44 }
 0x1ee   : > { %1489 = vmatprep.mubr.bf16.mxu1 %v1723_v45  ;;  %1539 = vmatpush3.bf16.msra.mxu1 (!%p1288_p10), %v1729_v35 }
 0x1ef   : > { %1532 = vmatprep.subr.bf16.mxu1 (!%p1288_p10), %v1730_v36 }
 0x1f2   : > { %1540 = vmatpush3.bf16.msra.mxu1 (!%p1288_p10), %v1730_v36 }
 0x1f5   : > { %1490 = vmatmul.mubr.bf16.gmra.mrb[8].mxu1 %v1724_v46 }
 0x1f6   : > { %1493 = vmatprep.mubr.bf16.mxu1 %v1725_v47 }
 0x1fd   : > { %1494 = vmatmul.mubr.bf16.gmra.mrb[12].mxu1 %v1726_v48  ;;  %v1731_v48 = vld [vmem:[#allocation9 + $0x20] sm:$0xff] (!%p1288_p10)  }
 0x1fe   : > { %1505 = vmatprep.subr.bf16.mxu0 (!%p1288_p10), %v1731_v48  ;;  %1533 = vmatprep.subr.bf16.mxu1 (!%p1288_p10), %v1731_v48 }
 0x1ff   : > { %1506 = vmatpush3.bf16.msra.mxu0 (!%p1288_p10), %v1731_v48  ;;  %1541 = vmatpush3.bf16.msra.mxu1 (!%p1288_p10), %v1731_v48 }
 0x2b8   : > { %v1483_v51 = vpop.f32.mrb[0].mxu1 }
 0x2b9   : > { %v764_v53 = vadd.f32 %v1483_v51, %v579_v49  ;;  %v699_v54 = vpop.f32.mrb[1].mxu1 }
 0x2ba   : > { %v762_v56 = vadd.f32 %v699_v54, %v577_v50  ;;  %v1484_v57 = vpop.f32.mrb[2].mxu1  ;;  %v1733_v54 = vld [vmem:[#allocation9 + $0x30] sm:$0xff] (!%p1288_p10)  }
 0x2bb   : > { %780 = vst [vmem:[#allocation2 + $0x10] sm:$0xff] %v764_v53  ;;  %v765_v58 = vadd.f32 %v1484_v57, %v580_v52  ;;  %v702_v59 = vpop.f32.mrb[3].mxu1  ;;  %v1732_v53 = vld [vmem:[#allocation9 + $0x28] sm:$0xff] (!%p1288_p10)  }
 0x2bc   : > { %778 = vst [vmem:[#allocation2] sm:$0xff] %v762_v56  ;;  %v763_v60 = vadd.f32 %v702_v59, %v578_v55  ;;  %1507 = vmatprep.subr.bf16.mxu0 (!%p1288_p10), %v1732_v53  ;;  %1534 = vmatprep.subr.bf16.mxu1 (!%p1288_p10), %v1732_v53 }
 0x2bd   : > { %781 = vst [vmem:[#allocation2 + $0x18] sm:$0xff] %v765_v58  ;;  %1508 = vmatpush3.bf16.msra.mxu0 (!%p1288_p10), %v1732_v53  ;;  %1542 = vmatpush3.bf16.msra.mxu1 (!%p1288_p10), %v1732_v53 }
 0x2be   : > { %779 = vst [vmem:[#allocation2 + $0x8] sm:$0xff] %v763_v60  ;;  %1509 = vmatprep.subr.bf16.mxu0 (!%p1288_p10), %v1733_v54  ;;  %1535 = vmatprep.subr.bf16.mxu1 (!%p1288_p10), %v1733_v54 }
 0x2c0   : > { %v1487_v63 = vpop.f32.mrb[4].mxu1 }
 0x2c1   : > { %v768_v1 = vadd.f32 %v1487_v63, %v583_v61  ;;  %v715_v2 = vpop.f32.mrb[5].mxu1  ;;  %1510 = vmatpush3.bf16.msra.mxu0 (!%p1288_p10), %v1733_v54  ;;  %1543 = vmatpush3.bf16.msra.mxu1 (!%p1288_p10), %v1733_v54 }
 0x2c2   : > { %v766_v4 = vadd.f32 %v715_v2, %v581_v62  ;;  %v1488_v5 = vpop.f32.mrb[6].mxu1  ;;  %v800_v55 = vld [vmem:[#allocation2 + $0x10] sm:$0xff] (!%p1288_p10) }
 0x2c3   : > { %784 = vst [vmem:[#allocation2 + $0x30] sm:$0xff] %v768_v1  ;;  %v769_v6 = vadd.f32 %v1488_v5, %v584_v0  ;;  %v718_v7 = vpop.f32.mrb[7].mxu1  ;;  %v798_v37 = vld [vmem:[#allocation2] sm:$0xff] (!%p1288_p10)  ;;  %v823_v63 = vadd.f32 (!%p1288_p10), %v2410_v39, %v800_v55 }
 0x2c4   : > { %782 = vst [vmem:[#allocation2 + $0x20] sm:$0xff] %v766_v4  ;;  %v767_v8 = vadd.f32 %v718_v7, %v582_v3  ;;  %v821_v40 = vadd.f32 (!%p1288_p10), %v2410_v39, %v798_v37  ;;  %v801_v56 = vld [vmem:[#allocation2 + $0x18] sm:$0xff] (!%p1288_p10) }
 0x2c5   : > { %785 = vst [vmem:[#allocation2 + $0x38] sm:$0xff] %v769_v6  ;;  %v799_v38 = vld [vmem:[#allocation2 + $0x8] sm:$0xff] (!%p1288_p10)  ;;  %v824_v0 = vadd.f32 (!%p1288_p10), %v2410_v39, %v801_v56  ;;  %v1734_v7 = vld [vmem:[#allocation9 + $0x38] sm:$0xff] (!%p1288_p10)  }
 0x2c6   : > { %783 = vst [vmem:[#allocation2 + $0x28] sm:$0xff] %v767_v8  ;;  %v822_v41 = vadd.f32 (!%p1288_p10), %v2410_v39, %v799_v38  ;;  %v837_v46 = vmax.f32 (!%p1288_p10), %v821_v40, 0.0  ;;  %v839_v8 = vmax.f32 (!%p1288_p10), %v823_v63, 0.0  ;;  %1511 = vmatprep.subr.bf16.mxu0 (!%p1288_p10), %v1734_v7  ;;  %1536 = vmatprep.subr.bf16.mxu1 (!%p1288_p10), %v1734_v7 }
 0x2c7   : > { %1512 = vmatpush3.bf16.msra.mxu0 (!%p1288_p10), %v1734_v7  ;;  %1544 = vmatpush3.bf16.msra.mxu1 (!%p1288_p10), %v1734_v7 }
 0x2c8   : > { %v1491_v11 = vpop.f32.mrb[8].mxu1  ;;  %v838_v47 = vmax.f32 (!%p1288_p10), %v822_v41, 0.0 }
 0x2c9   : > { %v772_v13 = vadd.f32 %v1491_v11, %v587_v9  ;;  %v731_v14 = vpop.f32.mrb[9].mxu1  ;;  %v840_v9 = vmax.f32 (!%p1288_p10), %v824_v0, 0.0 }
 0x2ca   : > { %v770_v16 = vadd.f32 %v731_v14, %v585_v10  ;;  %v1492_v17 = vpop.f32.mrb[10].mxu1  ;;  %v853_v51 = vpack.c.bf16 (!%p1288_p10), %v838_v47, %v837_v46 }
 0x2cb   : > { %788 = vst [vmem:[#allocation2 + $0x50] sm:$0xff] %v772_v13  ;;  %v773_v18 = vadd.f32 %v1492_v17, %v588_v12  ;;  %v734_v19 = vpop.f32.mrb[11].mxu1  ;;  %v802_v59 = vld [vmem:[#allocation2 + $0x20] sm:$0xff] (!%p1288_p10)  ;;  %v804_v12 = vld [vmem:[#allocation2 + $0x30] sm:$0xff] (!%p1288_p10) }
 0x2cc   : > { %786 = vst [vmem:[#allocation2 + $0x40] sm:$0xff] %v770_v16  ;;  %v771_v20 = vadd.f32 %v734_v19, %v586_v15  ;;  %1513 = vmatprep.mubr.bf16.mxu0 (!%p1288_p10), %v853_v51  ;;  %v825_v3 = vadd.f32 (!%p1288_p10), %v2410_v39, %v802_v59  ;;  %v805_v13 = vld [vmem:[#allocation2 + $0x38] sm:$0xff] (!%p1288_p10) }
 0x2cd   : > { %789 = vst [vmem:[#allocation2 + $0x58] sm:$0xff] %v773_v18  ;;  %v803_v60 = vld [vmem:[#allocation2 + $0x28] sm:$0xff] (!%p1288_p10) }
 0x2ce   : > { %787 = vst [vmem:[#allocation2 + $0x48] sm:$0xff] %v771_v20  ;;  %v826_v4 = vadd.f32 (!%p1288_p10), %v2410_v39, %v803_v60  ;;  %v841_v14 = vmax.f32 (!%p1288_p10), %v825_v3, 0.0  ;;  %v854_v20 = vpack.c.bf16 (!%p1288_p10), %v840_v9, %v839_v8 }
 0x2d0   : > { %v1495_v23 = vpop.f32.mrb[12].mxu1  ;;  %797 = sbr.rel (%p1288_p10) target bundleno = 959 (0x3bf), region = 64  ;;  %v842_v15 = vmax.f32 (!%p1288_p10), %v826_v4, 0.0  ;;  %1514 = vmatmul.mubr.bf16.vlgmr.msra.gmra.mrb[0].mxu0 (!%p1288_p10), %v854_v20 }
 0x2d1   : > { %v776_v25 = vadd.f32 %v1495_v23, %v591_v21  ;;  %v747_v26 = vpop.f32.mrb[13].mxu1  ;;  %v827_v21 = vadd.f32 (!%p1288_p10), %v2410_v39, %v804_v12  ;;  %v828_v23 = vadd.f32 (!%p1288_p10), %v2410_v39, %v805_v13 }
 0x2d2   : > { %v774_v28 = vadd.f32 %v747_v26, %v589_v22  ;;  %v1496_v29 = vpop.f32.mrb[14].mxu1  ;;  %v808_v57 = vld [vmem:[#allocation2 + $0x50] sm:$0xff] (!%p1288_p10)  ;;  %v855_v26 = vpack.c.bf16 (!%p1288_p10), %v842_v15, %v841_v14 }
 0x2d3   : > { %792 = vst [vmem:[#allocation2 + $0x70] sm:$0xff] %v776_v25  ;;  %v777_v30 = vadd.f32 %v1496_v29, %v592_v24  ;;  %v750_v31 = vpop.f32.mrb[15].mxu1  ;;  %v806_v42 = vld [vmem:[#allocation2 + $0x40] sm:$0xff] (!%p1288_p10)  ;;  %v831_v1 = vadd.f32 (!%p1288_p10), %v2410_v39, %v808_v57  ;;  %v844_v29 = vmax.f32 (!%p1288_p10), %v828_v23, 0.0 }
 0x2d4   : > { %790 = vst [vmem:[#allocation2 + $0x60] sm:$0xff] %v774_v28  ;;  %v775_v32 = vadd.f32 %v750_v31, %v590_v27  ;;  %v829_v44 = vadd.f32 (!%p1288_p10), %v2410_v39, %v806_v42  ;;  %v809_v58 = vld [vmem:[#allocation2 + $0x58] sm:$0xff] (!%p1288_p10)  ;;  %v843_v28 = vmax.f32 (!%p1288_p10), %v827_v21, 0.0  ;;  %1517 = vmatprep.mubr.bf16.mxu0 (!%p1288_p10), %v855_v26 }
 0x2d5   : > { %793 = vst [vmem:[#allocation2 + $0x78] sm:$0xff] %v777_v30  ;;  %v807_v43 = vld [vmem:[#allocation2 + $0x48] sm:$0xff] (!%p1288_p10)  ;;  %v832_v2 = vadd.f32 (!%p1288_p10), %v2410_v39, %v809_v58  ;;  %v847_v10 = vmax.f32 (!%p1288_p10), %v831_v1, 0.0 }
 0x2d6   : > { %791 = vst [vmem:[#allocation2 + $0x68] sm:$0xff] %v775_v32  ;;  %v830_v45 = vadd.f32 (!%p1288_p10), %v2410_v39, %v807_v43  ;;  %v845_v49 = vmax.f32 (!%p1288_p10), %v829_v44, 0.0  ;;  %v856_v32 = vpack.c.bf16 (!%p1288_p10), %v844_v29, %v843_v28 }
 0x2d7   : > { %v848_v11 = vmax.f32 %v832_v2, 0.0 }
 0x2d8   : > { %v846_v50 = vmax.f32 %v830_v45, 0.0  ;;  %1518 = vmatmul.mubr.bf16.gmra.mrb[4].mxu0 %v856_v32 }
 0x2d9   : > { %v858_v22 = vpack.c.bf16 %v848_v11, %v847_v10 }
 0x2da   : > { %v857_v52 = vpack.c.bf16 %v846_v50, %v845_v49  ;;  %v812_v18 = vld [vmem:[#allocation2 + $0x70] sm:$0xff] }
 0x2db   : > { %v810_v61 = vld [vmem:[#allocation2 + $0x60] sm:$0xff]  ;;  %v835_v24 = vadd.f32 %v2410_v39, %v812_v18 }
 0x2dc   : > { %1521 = vmatprep.mubr.bf16.mxu1 %v857_v52  ;;  %v833_v5 = vadd.f32 %v2410_v39, %v810_v61  ;;  %v813_v19 = vld [vmem:[#allocation2 + $0x78] sm:$0xff] }
 0x2dd   : > { %v811_v62 = vld [vmem:[#allocation2 + $0x68] sm:$0xff]  ;;  %v836_v25 = vadd.f32 %v2410_v39, %v813_v19  ;;  %1522 = vmatmul.mubr.bf16.vlgmr.msra.gmra.mrb[0].mxu1 %v858_v22  ;;  %v851_v30 = vmax.f32 %v835_v24, 0.0 }
 0x2de   : > { %v834_v6 = vadd.f32 %v2410_v39, %v811_v62  ;;  %v849_v16 = vmax.f32 %v833_v5, 0.0 }
 0x2df   : > { %v852_v31 = vmax.f32 %v836_v25, 0.0 }
 0x2e0   : > { %v850_v17 = vmax.f32 %v834_v6, 0.0 }
 0x2e1   : > { %v860_v33 = vpack.c.bf16 %v852_v31, %v851_v30 }
 0x2e2   : > { %v859_v27 = vpack.c.bf16 %v850_v17, %v849_v16 }
 0x2e4   : > { %1525 = vmatprep.mubr.bf16.mxu1 %v859_v27 }
 0x2e5   : > { %1526 = vmatmul.mubr.bf16.gmra.mrb[4].mxu1 %v860_v33 }
 0x3a3   : > { %v1515_v34 = vpop.f32.mrb[0].mxu0 }
 0x3a4   : > { %v959_v36 = vpop.f32.mrb[1].mxu0 }
 0x3a5   : > { %v1516_v38 = vpop.f32.mrb[2].mxu0 }
 0x3a6   : > { %v1346_v40 = vpack.c.bf16 %v1516_v38, %v1515_v34  ;;  %v962_v42 = vpop.f32.mrb[3].mxu0 }
 0x3a7   : > { %v1341_v44 = vpack.c.bf16 %v962_v42, %v959_v36 }
 0x3a8   : > { %1378 = vst [vmem:[%s2387_s21 + $0x8] sm:$0xff] %v1346_v40  }
 0x3a9   : > { %1342 = vst [vmem:[%s2387_s21] sm:$0xff] %v1341_v44  }
 0x3ab   : > { %v1519_v46 = vpop.f32.mrb[4].mxu0 }
 0x3ac   : > { %v975_v48 = vpop.f32.mrb[5].mxu0 }
 0x3ad   : > { %v1520_v50 = vpop.f32.mrb[6].mxu0 }
 0x3ae   : > { %v1356_v52 = vpack.c.bf16 %v1520_v50, %v1519_v46  ;;  %v978_v54 = vpop.f32.mrb[7].mxu0 }
 0x3af   : > { %v1351_v56 = vpack.c.bf16 %v978_v54, %v975_v48 }
 0x3b0   : > { %v1523_v35 = vpop.f32.mrb[0].mxu1  ;;  %1380 = vst [vmem:[%s2387_s21 + $0x18] sm:$0xff] %v1356_v52  }
 0x3b1   : > { %v991_v37 = vpop.f32.mrb[1].mxu1  ;;  %1379 = vst [vmem:[%s2387_s21 + $0x10] sm:$0xff] %v1351_v56  }
 0x3b2   : > { %v1524_v39 = vpop.f32.mrb[2].mxu1 }
 0x3b3   : > { %v1366_v41 = vpack.c.bf16 %v1524_v39, %v1523_v35  ;;  %v994_v43 = vpop.f32.mrb[3].mxu1 }
 0x3b4   : > { %v1361_v45 = vpack.c.bf16 %v994_v43, %v991_v37 }
 0x3b5   : > { %1382 = vst [vmem:[%s2387_s21 + $0x28] sm:$0xff] %v1366_v41  }
 0x3b6   : > { %1381 = vst [vmem:[%s2387_s21 + $0x20] sm:$0xff] %v1361_v45  }
 0x3b8   : > { %v1527_v47 = vpop.f32.mrb[4].mxu1 }
 0x3b9   : > { %v1007_v49 = vpop.f32.mrb[5].mxu1 }
 0x3ba   : > { %v1528_v51 = vpop.f32.mrb[6].mxu1 }
 0x3bb   : > { %v1376_v53 = vpack.c.bf16 %v1528_v51, %v1527_v47  ;;  %v1010_v55 = vpop.f32.mrb[7].mxu1 }
 0x3bc   : > { %v1371_v57 = vpack.c.bf16 %v1010_v55, %v1007_v49 }
 0x3bd   : > { %1384 = vst [vmem:[%s2387_s21 + $0x38] sm:$0xff] %v1376_v53  }
 0x3be   : > { %1383 = vst [vmem:[%s2387_s21 + $0x30] sm:$0xff] %v1371_v57  }
 0x3bf PF: > { %s2594_s13 = sld [smem:[#allocation20_spill]]  ;;  %s2596_s15 = sld [smem:[#allocation23_spill]] }
 0x3c0   : > { %s2597_s14 = sld [smem:[#allocation29_spill]]  ;;  %s1116_s10 = sshll.u32 %s2387_s21, 4  ;;  %s2443_s10 = int_to_ptr.vmem [resolvable:$true] %s1116_s10 }
 0x3c1   : > { %s2447_s2 = scalar_lea.sflag [#allocation5], %s325_s7  ;;  %s1851_s4 = scalar_lea.vmem %s2443_s10, 1024 }
 0x3c2   : > { %p1852_p7 = scmp.ne.s32.totalorder %s2443_s10, %s1851_s4  ;;  %s2019_s11 = smov [#allocation11]  }
 0x3c3   : > { %s1855_s3 = sshll.u32 %s2019_s11, 4  ;;  %s1856_s3 = int_to_ptr.vmem [resolvable:$false] %s1855_s3 }
 0x3c4   : > { %s1857_s24 = scalar_lea.vmem %s1856_s3, 2048  ;;  %p1858_p12 = scmp.lt.s32.totalorder %s2443_s10, %s1856_s3 }
 0x3c5   : > { %s1337_s28 = sshll.u32 %s2594_s13, 10  ;;  %p2598_p0 = scmp.ne.s32.totalorder %s2596_s15, 0 }
 0x3c6   : > { %s2440_s16 = scalar_lea.hbm %s2597_s14, %s1337_s28  ;;  %p1859_p5 = scmp.lt.s32.totalorder %s1857_s24, %s1851_s4 }
 0x3c7   : > { %p1853_p13 = pnand %p1852_p7, %p2598_p0 }
 0x3c8   : > { %p1860_p4 = por %p1859_p5, %p1858_p12 }
 0x3c9   : > { %p1854_p8 = pneg %p1853_p13 }
 0x3cb   : > { %p1861_p9 = pnand %p1860_p4, %p1854_p8 }
 0x3cd   : > { %1864 = shalt.err (!%p1861_p9)
}
 0x3ce   : > { %s1865_s7 = scalar_lea.hbm %s2440_s16, 1024  ;;  %s1869_s13 = scalar_lea.hbm %s2597_s14, 2048 }
 0x3cf   : > { %p1866_p6 = scmp.ne.s32.totalorder %s2440_s16, %s1865_s7  ;;  %p1870_p3 = scmp.lt.u32.totalorder %s2440_s16, %s2597_s14 }
 0x3d0   : > { %p1871_p11 = scmp.lt.u32.totalorder %s1869_s13, %s1865_s7  ;;  %p1873_p7 = scmp.lt.u32.totalorder %s1865_s7, %s2440_s16 }
 0x3d1   : > { %p1867_p1 = pnand %p1866_p6, %p2598_p0 }
 0x3d2   : > { %p1872_p10 = por %p1871_p11, %p1870_p3 }
 0x3d3   : > { %p1868_p2 = pneg %p1867_p1 }
 0x3d4   : > { %p1874_p13 = por %p1873_p7, %p1872_p10 }
 0x3d6   : > { %p1875_p8 = pnand %p1874_p13, %p1868_p2 }
 0x3d8   : > { %1878 = shalt.err (!%p1875_p8)
}
 0x3d9   : > { %s2020_s9 = smov 64   ;;  %s2021_s19 = smov 4  }
 0x3da   : > { %1557 = dma.vmem_to_hbm [thread:$0]  (%p2598_p0), %s2443_s10, 1024, %s2440_s16, %s2447_s2, %s2020_s9, %s2020_s9, %s2021_s19  }
 0x3db PF: > { %s2599_s4 = sld [smem:[#allocation17_spill]]  ;;  %s2600_s11 = sld [smem:[#allocation24_spill]] }
 0x3dc   : > { %p1582_p12 = scmp.ge.s32.totalorder %s2009_s6, 2 }
 0x3e1   : > { %s1131_s3 = sand.u32 1, %s2599_s4   ;;  %p2601_p5 = scmp.ne.s32.totalorder %s2600_s11, 0 }
 0x3e2   : > { %s1132_s24 = scalar_lea.sflag [#allocation5], %s1131_s3 }
 0x3e3   : > { %p1574_p4 = pnand %p1582_p12, %p2601_p5 }
 0x3e5   : > { %1952 = dma.done.wait (!%p1574_p4), %s1132_s24, 1024  }
 0x3e6   : > { %1954 = vsyncadd (!%p1574_p4), %s1132_s24, 4294966272  ;;  %s25_s6 = sadd.s32 1, %s2009_s6   ;;  %s2603_s21 = sld [smem:[#allocation18_spill]] }
 0x3e7   : > { %p2476_p9 = scmp.ge.s32.totalorder %s25_s6, 6   ;;  %s2604_s15 = smov %s2254_s18 }
 0x3e8   : > { %s2605_s16 = sld [smem:[#allocation25_spill]]  ;;  %s2607_s19 = smov %s1965_s20 }
 0x3e9   : > { %s2608_s20 = smov %s2251_s27  ;;  %s2612_s24 = smov %s1985_s25 }
 0x3ea   : > { %s2613_s25 = smov %s1989_s26  ;;  %s2614_s26 = smov %s2604_s15 }
 0x3eb   : > { %s2615_s27 = smov %s2001_s29  ;;  %s2616_s28 = smov %s2005_s30 }
 0x3ec   : > { %s2606_s18 = smov %s2603_s21  ;;  %s2609_s21 = smov %s1973_s22 }
 0x3ed   : > { %s2610_s22 = smov %s1977_s23  ;;  %s2611_s23 = smov %s2308_s5 }
 0x3ee   : > { %s2617_s29 = smov %s2605_s16  ;;  %s2618_s30 = smov %s2624_s17 }
 0x3ef   :  { %24 = sbr.rel (!%p2476_p9) target bundleno = 18 (0x12), region = 114 }
 0x3f6   :  { %1137 = vsyncpa [#allocation4], 1 }
 0x3f7   :  { %1139 = vsyncpa [#allocation4 + $0x1], 1 }
 0x3f8   :  { %1140 = vsyncpa [#allocation7], 1 }
 0x3f9   :  { %1142 = vsyncpa [#allocation7 + $0x1], 1 }
 0x3fa   :  { %1143 = vsyncpa [#allocation10], 1 }
 0x3fb   :  { %1144 = vsyncpa [#allocation5], 1 }
 0x3fc   :  { %1146 = vsyncpa [#allocation5 + $0x1], 1 }

</bundles_post_ra>
